<compile_context>
chip_gen: v7x
topology: tpu7x:2x2x1
jax: 0.10.0
libtpu: 0.0.40
codegen_flags: <defaults>
</compile_context>

<pallas_src>
import jax
import jax.numpy as jnp
from jax.experimental import pallas as pl
from jax.experimental.pallas import tpu as pltpu


def _round_up(n, m):
    return ((n + m - 1) // m) * m


def _pca_decoder_kernel(x_ref, w1_ref, b1_ref, w2_ref, b2_ref, o_ref):
    # h = relu(x @ W1' + b1), where W1' = pca_matrix @ w1 was folded in the wrapper.
    h = jnp.dot(x_ref[...], w1_ref[...], preferred_element_type=jnp.float32)
    h = jnp.maximum(h + b1_ref[...], 0.0)                       # f32 bias + ReLU (VPU)
    # y = h @ w2 + b2  (bf16 MXU, f32 accumulate)
    y = jnp.dot(h.astype(w2_ref.dtype), w2_ref[...],
                preferred_element_type=jnp.float32)
    o_ref[...] = (y + b2_ref[...]).astype(o_ref.dtype)


def pca_decoder(x, pca_matrix, w1, b1, w2, b2, *, block_b=256):
    """Fused PCA-projection + 2-layer MLP decoder.

    x:          (B, latent)        f32
    pca_matrix: (latent, pca_dim)  f32
    w1, b1:     (pca_dim, hidden), (1, hidden)
    w2, b2:     (hidden, out_dim), (1, out_dim)
    returns:    (B, out_dim)       f32
    """
    B, latent = x.shape
    hidden = w1.shape[1]
    out_dim = w2.shape[1]

    # ---- algebraic fold: (x @ pca) @ w1 == x @ (pca @ w1) --------------------
    w1f = jnp.dot(pca_matrix.astype(jnp.float32), w1.astype(jnp.float32))

    # ---- zero-pad hidden dim to a lane-dense multiple of 128 (exact) ---------
    hidden_p = max(128, _round_up(hidden, 128))
    b1 = b1.reshape(1, hidden)
    b2 = b2.reshape(1, out_dim)
    if hidden_p != hidden:
        w1f = jnp.pad(w1f, ((0, 0), (0, hidden_p - hidden)))
        b1 = jnp.pad(b1, ((0, 0), (0, hidden_p - hidden)))
        w2 = jnp.pad(w2, ((0, hidden_p - hidden), (0, 0)))

    # ---- bf16 for the streamed activation and the resident weights ----------
    x_bf = x.astype(jnp.bfloat16)
    w1_bf = w1f.astype(jnp.bfloat16)
    w2_bf = w2.astype(jnp.bfloat16)
    b1_f32 = b1.astype(jnp.float32)
    b2_f32 = b2.astype(jnp.float32)

    # ---- batch tiling (double-buffered pipeline over the grid) --------------
    tb = _round_up(min(block_b, _round_up(B, 8)), 8)
    B_pad = _round_up(B, tb)
    if B_pad != B:
        x_bf = jnp.pad(x_bf, ((0, B_pad - B), (0, 0)))
    grid = (B_pad // tb,)

    cost = pl.CostEstimate(
        flops=2 * B_pad * (latent * hidden_p + hidden_p * out_dim),
        transcendentals=0,
        bytes_accessed=(x_bf.size * 2 + B_pad * out_dim * 4
                        + w1_bf.size * 2 + w2_bf.size * 2
                        + b1_f32.size * 4 + b2_f32.size * 4),
    )

    out = pl.pallas_call(
        _pca_decoder_kernel,
        out_shape=jax.ShapeDtypeStruct((B_pad, out_dim), jnp.float32),
        grid=grid,
        in_specs=[
            pl.BlockSpec((tb, latent), lambda i: (i, 0)),         # x: streamed per tile
            pl.BlockSpec((latent, hidden_p), lambda i: (0, 0)),   # W1': resident
            pl.BlockSpec((1, hidden_p), lambda i: (0, 0)),        # b1: resident
            pl.BlockSpec((hidden_p, out_dim), lambda i: (0, 0)),  # w2: resident
            pl.BlockSpec((1, out_dim), lambda i: (0, 0)),         # b2: resident
        ],
        out_specs=pl.BlockSpec((tb, out_dim), lambda i: (i, 0)),
        compiler_params=pltpu.CompilerParams(
            dimension_semantics=("parallel",)),                   # megacore split on v7x
        cost_estimate=cost,
    )(x_bf, w1_bf, b1_f32, w2_bf, b2_f32)

    return out[:B] if B_pad != B else out


def reference(x, pca_matrix, w1, b1, w2, b2):
    # Original (un-folded) f32 math, matching the PyTorch module order.
    z = x @ pca_matrix
    h = jnp.maximum(z @ w1 + b1, 0.0)
    return h @ w2 + b2


if __name__ == "__main__":
    key = jax.random.PRNGKey(0)
    k_x, k_pca, k_w1, k_b1, k_w2, k_b2 = jax.random.split(key, 6)

    # Small shapes consistent with an autoencoder-style PCA decoder.
    # batch > tile so the grid actually pipelines (2 batch tiles of 128).
    batch, latent, pca_dim, hidden, out_dim = 256, 16, 32, 64, 128

    x = jax.random.normal(k_x, (batch, latent), dtype=jnp.float32)
    pca_matrix = jax.random.normal(k_pca, (latent, pca_dim), dtype=jnp.float32) * 0.1
    w1 = jax.random.normal(k_w1, (pca_dim, hidden), dtype=jnp.float32) * 0.1
    b1 = jax.random.normal(k_b1, (1, hidden), dtype=jnp.float32) * 0.01
    w2 = jax.random.normal(k_w2, (hidden, out_dim), dtype=jnp.float32) * 0.1
    b2 = jax.random.normal(k_b2, (1, out_dim), dtype=jnp.float32) * 0.01

    out = pca_decoder(x, pca_matrix, w1, b1, w2, b2, block_b=128)
    out = jax.block_until_ready(out)

    ref = reference(x, pca_matrix, w1, b1, w2, b2)
    assert out.shape == (batch, out_dim)
    # bf16 activation/weight path -> relaxed tolerance vs the f32 reference.
    assert jnp.allclose(out, ref, atol=5e-2, rtol=5e-2), "mismatch vs reference"

    print("KERNEL_OK")
</pallas_src>

<mosaic_0001>
module attributes {stable_mosaic.version = 11 : i64} {
  func.func @_pca_decoder_kernel(%arg0: i32, %arg1: memref<128x16xbf16, #tpu.memory_space<vmem>>, %arg2: memref<16x128xbf16, #tpu.memory_space<vmem>>, %arg3: memref<1x128xf32, #tpu.memory_space<vmem>>, %arg4: memref<128x128xbf16, #tpu.memory_space<vmem>>, %arg5: memref<1x128xf32, #tpu.memory_space<vmem>>, %arg6: memref<128x128xf32, #tpu.memory_space<vmem>>) attributes {dimension_semantics = [#tpu.dimension_semantics<parallel>], iteration_bounds = array<i64: 2>, scalar_prefetch = 0 : i64, scratch_operands = 0 : i64, tpu.core_type = #tpu.core_type<tc>, window_params = [{transform_indices = @transform_0, window_bounds = array<i64: 128, 16>}, {pipeline_mode = #tpu.pipeline_mode<synchronous>, transform_indices = @transform_1, window_bounds = array<i64: 16, 128>}, {pipeline_mode = #tpu.pipeline_mode<synchronous>, transform_indices = @transform_2, window_bounds = array<i64: 1, 128>}, {pipeline_mode = #tpu.pipeline_mode<synchronous>, transform_indices = @transform_3, window_bounds = array<i64: 128, 128>}, {pipeline_mode = #tpu.pipeline_mode<synchronous>, transform_indices = @transform_4, window_bounds = array<i64: 1, 128>}, {transform_indices = @transform_5, window_bounds = array<i64: 128, 128>}]} {
    %c0 = arith.constant 0 : index
    %c0_0 = arith.constant 0 : index
    %0 = vector.load %arg1[%c0, %c0_0] : memref<128x16xbf16, #tpu.memory_space<vmem>>, vector<128x16xbf16>
    %c0_1 = arith.constant 0 : index
    %c0_2 = arith.constant 0 : index
    %1 = vector.load %arg2[%c0_1, %c0_2] : memref<16x128xbf16, #tpu.memory_space<vmem>>, vector<16x128xbf16>
    %cst = arith.constant dense<0.000000e+00> : vector<128x128xf32>
    %2 = tpu.matmul %0, %1, %cst {dimension_numbers = #tpu.dot_dimension_numbers<[1], [0], [0], [1], [0, 0, 1, 1], [], []>} : vector<128x16xbf16>, vector<16x128xbf16>, vector<128x128xf32> -> vector<128x128xf32>
    %c0_3 = arith.constant 0 : index
    %c0_4 = arith.constant 0 : index
    %3 = vector.load %arg3[%c0_3, %c0_4] : memref<1x128xf32, #tpu.memory_space<vmem>>, vector<1x128xf32>
    %4 = vector.broadcast %3 : vector<1x128xf32> to vector<128x128xf32>
    %5 = arith.addf %2, %4 : vector<128x128xf32>
    %cst_5 = arith.constant 0.000000e+00 : f32
    %6 = vector.broadcast %cst_5 : f32 to vector<128x128xf32>
    %7 = arith.maximumf %5, %6 : vector<128x128xf32>
    %8 = arith.truncf %7 : vector<128x128xf32> to vector<128x128xbf16>
    %c0_6 = arith.constant 0 : index
    %c0_7 = arith.constant 0 : index
    %9 = vector.load %arg4[%c0_6, %c0_7] : memref<128x128xbf16, #tpu.memory_space<vmem>>, vector<128x128xbf16>
    %cst_8 = arith.constant dense<0.000000e+00> : vector<128x128xf32>
    %10 = tpu.matmul %8, %9, %cst_8 {dimension_numbers = #tpu.dot_dimension_numbers<[1], [0], [0], [1], [0, 0, 1, 1], [], []>} : vector<128x128xbf16>, vector<128x128xbf16>, vector<128x128xf32> -> vector<128x128xf32>
    %c0_9 = arith.constant 0 : index
    %c0_10 = arith.constant 0 : index
    %11 = vector.load %arg5[%c0_9, %c0_10] : memref<1x128xf32, #tpu.memory_space<vmem>>, vector<1x128xf32>
    %12 = vector.broadcast %11 : vector<1x128xf32> to vector<128x128xf32>
    %13 = arith.addf %10, %12 : vector<128x128xf32>
    %c0_11 = arith.constant 0 : index
    %c0_12 = arith.constant 0 : index
    %14 = vector.load %arg6[%c0_11, %c0_12] : memref<128x128xf32, #tpu.memory_space<vmem>>, vector<128x128xf32>
    tpu.vector_store %arg6[%c0_11, %c0_12], %13 {strides = array<i32>} : memref<128x128xf32, #tpu.memory_space<vmem>>, vector<128x128xf32>,
    return
  }
  func.func @transform_0(%arg0: i32) -> (i32, i32) {
    %c0_i32 = arith.constant 0 : i32
    %c0_i32_0 = arith.constant 0 : i32
    return %arg0, %c0_i32 : i32, i32
  }
  func.func @transform_1(%arg0: i32) -> (i32, i32) {
    %c0_i32 = arith.constant 0 : i32
    %c0_i32_0 = arith.constant 0 : i32
    %c0_i32_1 = arith.constant 0 : i32
    return %c0_i32, %c0_i32_0 : i32, i32
  }
  func.func @transform_2(%arg0: i32) -> (i32, i32) {
    %c0_i32 = arith.constant 0 : i32
    %c0_i32_0 = arith.constant 0 : i32
    %c0_i32_1 = arith.constant 0 : i32
    return %c0_i32, %c0_i32_0 : i32, i32
  }
  func.func @transform_3(%arg0: i32) -> (i32, i32) {
    %c0_i32 = arith.constant 0 : i32
    %c0_i32_0 = arith.constant 0 : i32
    %c0_i32_1 = arith.constant 0 : i32
    return %c0_i32, %c0_i32_0 : i32, i32
  }
  func.func @transform_4(%arg0: i32) -> (i32, i32) {
    %c0_i32 = arith.constant 0 : i32
    %c0_i32_0 = arith.constant 0 : i32
    %c0_i32_1 = arith.constant 0 : i32
    return %c0_i32, %c0_i32_0 : i32, i32
  }
  func.func @transform_5(%arg0: i32) -> (i32, i32) {
    %c0_i32 = arith.constant 0 : i32
    %c0_i32_0 = arith.constant 0 : i32
    return %arg0, %c0_i32 : i32, i32
  }
}

</mosaic_0001>

<bundles_post_ra>
// kernel: tpu_custom_call.1
= control target key start
LH: loop header
LB: loop body
LE: loop exit
PB: predicated region body
PF: predicated region fallthrough
CT: control target
= control target key end

     0   :  { %10 = vsyncpa [#allocation3], 0  ;;  %s1166_s0 = inlined_call_operand.vmem [shape: bf16[256,16], index: 0, kind: input, shape index: {}]   ;;  %s1167_s1 = inlined_call_operand.vmem [shape: bf16[16,128], index: 1, kind: input, shape index: {}]   ;;  %s1168_s2 = inlined_call_operand.vmem [shape: f32[1,128], index: 2, kind: input, shape index: {}]   ;;  %s1169_s3 = inlined_call_operand.vmem [shape: bf16[128,128], index: 3, kind: input, shape index: {}]   ;;  %s1170_s4 = inlined_call_operand.vmem [shape: f32[1,128], index: 4, kind: input, shape index: {}]   ;;  %s1171_s5 = inlined_call_operand.hbm [shape: f32[256,128], index: 5, kind: output, shape index: {}]  }
   0x1   :  { %12 = vsyncpa [#allocation3 + $0x1], 0  ;;  %s990_s18 = smov 0   ;;  %s992_s19 = smov 0  }
   0x2   :  { %s994_s20 = smov 0   ;;  %s996_s21 = smov 0  }
   0x3 LB: > { %s1011_s22 = sadd.s32 4294967295, %s955_s21   ;;  %s704_s23 = sadd.s32 4294967294, %s955_s21   ;;  %s955_s21 = sphi %s996_s21, %s1177_s21   ;;  %s951_s20 = sphi %s994_s20, %s1176_s20   ;;  %s947_s19 = sphi %s992_s19, %s1175_s19   ;;  %s943_s18 = sphi %s990_s18, %s1174_s18  }
   0x4   : > { %s1015_s24 = sadd.s32 1, %s955_s21   ;;  %s135_s25 = sadd.s32 1, %s951_s20 }
   0x5   : > { %s132_s26 = ssub.s32 %s955_s21, %s1015_s24  ;;  %p145_p0 = scmp.ne.s32.totalorder %s951_s20, %s947_s19 }
   0x6   : > { %p133_p1 = scmp.eq.s32.totalorder %s132_s26, 0  ;;  %p146_p2 = scmp.eq.s32.totalorder %s1011_s22, 1 }
   0x7   : > { %p151_p3 = scmp.ne.s32.totalorder %s947_s19, %s943_s18  ;;  %p152_p4 = scmp.eq.s32.totalorder %s704_s23, 1 }
   0x8   : > { %s1026_s27 = scalar_select %p133_p1, %s951_s20, %s135_s25  }
   0x9   : > { %p1028_p5 = por %p146_p2, %p145_p0  ;;  %p1032_p6 = por %p152_p4, %p151_p3 }
   0xa   : > { %p707_p7 = scmp.ge.s32.totalorder %s955_s21, 1  ;;  %p191_p8 = scmp.lt.s32.totalorder %s955_s21, 3 }
   0xc   : > { %p192_p9 = pnand %p707_p7, %p191_p8 }
   0xd   : > { %v876_v0 = vld [vmem:[%s1167_s1] sm:$0xff] (!%p192_p9)   ;;  %s709_s7 = sshll.u32 (!%p192_p9), %s1011_s22, 4  ;;  %v886_v2 = vld [vmem:[%s1169_s3 + $0x8] sm:$0xff] (!%p192_p9)   ;;  %vm298_vm0 = vcmask (!%p192_p9), 130048   ;;  %v887_v3 = vld [vmem:[%s1169_s3 + $0x10] sm:$0xff] (!%p192_p9)   ;;  %s216_s14 = sand.u32 (!%p192_p9), 1, %s947_s19  }
   0xe   : > { %195 = sbr.rel (%p192_p9) target bundleno = 504 (0x1f8), region = 40  ;;  %p220_p10 = scmp.lt.s32.totalorder (!%p192_p9), %s709_s7, 31  ;;  %769 = vmatprep.subr.bf16.mxu0 (!%p192_p9), %v876_v0  ;;  %v885_v1 = vld [vmem:[%s1169_s3] sm:$0xff] (!%p192_p9)   ;;  %v888_v7 = vld [vmem:[%s1169_s3 + $0x18] sm:$0xff] (!%p192_p9)   ;;  %v890_v11 = vld [vmem:[%s1169_s3 + $0x28] sm:$0xff] (!%p192_p9)  }
   0xf   : > { %770 = vmatpush3.bf16.msra.mxu0 (!%p192_p9), %v876_v0  ;;  %819 = vmatprep.subr.bf16.mxu1 (!%p192_p9), %v885_v1  ;;  %v889_v10 = vld [vmem:[%s1169_s3 + $0x20] sm:$0xff] (!%p192_p9)   ;;  %v891_v15 = vld [vmem:[%s1169_s3 + $0x30] sm:$0xff] (!%p192_p9)   ;;  %v892_v16 = vld [vmem:[%s1169_s3 + $0x38] sm:$0xff] (!%p192_p9)   ;;  %s743_s25 = sshll.u32 (!%p192_p9), %s1011_s22, 11  ;;  %s1125_s22 = scalar_lea.sflag (!%p192_p9), [#allocation3], %s216_s14 }
  0x10   : > { %787 = vmatprep.subr.bf16.mxu0 (!%p192_p9), %v885_v1  ;;  %827 = vmatpush3.bf16.msra.mxu1 (!%p192_p9), %v885_v1  ;;  %v711_v17 = vld [vmem:[%s1168_s2] ss:$0 sm:$0xff] (!%p192_p9)  ;;  %s957_s9 = smov (!%p192_p9), [#allocation2]  }
  0x11   : > { %820 = vmatprep.subr.bf16.mxu1 (!%p192_p9), %v886_v2  ;;  %s897_s10 = sshll.u32 (!%p192_p9), %s957_s9, 4  ;;  %s898_s10 = int_to_ptr.vmem [resolvable:$false] %s897_s10 }
  0x12   : > { %s899_s11 = scalar_lea.vmem (!%p192_p9), %s898_s10, 4096 }
  0x14   : > { %828 = vmatpush3.bf16.msra.mxu1 (!%p192_p9), %v886_v2 }
  0x15   : > { %s1179_s7 = smov (!%p220_p10, %s709_s7), 31  ;;  %821 = vmatprep.subr.bf16.mxu1 %v887_v3 }
  0x16   : > { %s710_s12 = sshll.u32 %s1179_s7, 2  ;;  %s1116_s7 = scalar_lea.hbm %s1171_s5, %s743_s25 }
  0x17   : > { %s1051_s15 = scalar_lea.vmem %s1166_s0, %s710_s12 }
  0x18   : > { %v877_v4 = vld [vmem:[%s1051_s15] sm:$0xff]   ;;  %v878_v5 = vld [vmem:[%s1051_s15 + $0x8] sm:$0xff]   ;;  %v879_v6 = vld [vmem:[%s1051_s15 + $0x10] sm:$0xff]   ;;  %829 = vmatpush3.bf16.msra.mxu1 %v887_v3 }
  0x19   : > { %771 = vmatprep.mubr.msk.bf16.mxu0 %vm298_vm0, %v877_v4  ;;  %v880_v8 = vld [vmem:[%s1051_s15 + $0x18] sm:$0xff]   ;;  %822 = vmatprep.subr.bf16.mxu1 %v888_v7  ;;  %v881_v9 = vld [vmem:[%s1051_s15 + $0x20] sm:$0xff]   ;;  %v882_v12 = vld [vmem:[%s1051_s15 + $0x28] sm:$0xff]  }
  0x1a   : > { %772 = vmatmul.mubr.msk.bf16.vlgmr.msra.gmra.mrb[0].mxu0 %vm298_vm0, %v878_v5  ;;  %v883_v13 = vld [vmem:[%s1051_s15 + $0x30] sm:$0xff]   ;;  %v884_v14 = vld [vmem:[%s1051_s15 + $0x38] sm:$0xff]   ;;  %s708_s15 = sshll.u32 %s216_s14, 7 }
  0x1b   : > { %775 = vmatprep.mubr.msk.bf16.mxu0 %vm298_vm0, %v879_v6  ;;  %788 = vmatpush3.bf16.msra.mxu0 %v885_v1  ;;  %s1096_s23 = scalar_lea.vmem [#allocation2], %s708_s15 }
  0x1c   : > { %789 = vmatprep.subr.bf16.mxu0 %v886_v2  ;;  %830 = vmatpush3.bf16.msra.mxu1 %v888_v7  ;;  %s642_s26 = sshll.u32 %s1096_s23, 4  ;;  %s1118_s26 = int_to_ptr.vmem [resolvable:$true] %s642_s26 }
  0x1d   : > { %823 = vmatprep.subr.bf16.mxu1 %v889_v10  ;;  %s893_s8 = scalar_lea.vmem %s1118_s26, 2048  ;;  %p900_p0 = scmp.lt.s32.totalorder %s1118_s26, %s898_s10 }
  0x1e   : > { %p894_p11 = scmp.ne.s32.totalorder %s1118_s26, %s893_s8  ;;  %p901_p1 = scmp.lt.s32.totalorder %s899_s11, %s893_s8 }
  0x1f   : > { %790 = vmatpush3.bf16.msra.mxu0 %v886_v2 }
  0x20   : > { %791 = vmatprep.subr.bf16.mxu0 %v887_v3  ;;  %831 = vmatpush3.bf16.msra.mxu1 %v889_v10  ;;  %p895_p12 = pnand %p894_p11, %p1028_p5  ;;  %p902_p2 = por %p901_p1, %p900_p0 }
  0x21   : > { %824 = vmatprep.subr.bf16.mxu1 %v890_v11 }
  0x22   : > { %776 = vmatmul.mubr.msk.bf16.gmra.mrb[4].mxu0 %vm298_vm0, %v880_v8  ;;  %p896_p13 = pneg %p895_p12 }
  0x23   : > { %779 = vmatprep.mubr.msk.bf16.mxu0 %vm298_vm0, %v881_v9  ;;  %792 = vmatpush3.bf16.msra.mxu0 %v887_v3 }
  0x24   : > { %793 = vmatprep.subr.bf16.mxu0 %v888_v7  ;;  %832 = vmatpush3.bf16.msra.mxu1 %v890_v11  ;;  %p903_p3 = pnand %p902_p2, %p896_p13 }
  0x25   : > { %825 = vmatprep.subr.bf16.mxu1 %v891_v15 }
  0x27   : > { %794 = vmatpush3.bf16.msra.mxu0 %v888_v7 }
  0x28   : > { %795 = vmatprep.subr.bf16.mxu0 %v889_v10  ;;  %833 = vmatpush3.bf16.msra.mxu1 %v891_v15 }
  0x29   : > { %826 = vmatprep.subr.bf16.mxu1 %v892_v16 }
  0x2a   : > { %780 = vmatmul.mubr.msk.bf16.gmra.mrb[8].mxu0 %vm298_vm0, %v882_v12 }
  0x2b   : > { %783 = vmatprep.mubr.msk.bf16.mxu0 %vm298_vm0, %v883_v13  ;;  %796 = vmatpush3.bf16.msra.mxu0 %v889_v10  ;;  %v729_v10 = vld [vmem:[%s1170_s4] ss:$0 sm:$0xff] }
  0x2c   : > { %797 = vmatprep.subr.bf16.mxu0 %v890_v11  ;;  %834 = vmatpush3.bf16.msra.mxu1 %v892_v16 }
  0x2f   : > { %798 = vmatpush3.bf16.msra.mxu0 %v890_v11 }
  0x30   : > { %799 = vmatprep.subr.bf16.mxu0 %v891_v15 }
  0x32   : > { %784 = vmatmul.mubr.msk.bf16.gmra.mrb[12].mxu0 %vm298_vm0, %v884_v14 }
  0x33   : > { %800 = vmatpush3.bf16.msra.mxu0 %v891_v15 }
  0x34   : > { %801 = vmatprep.subr.bf16.mxu0 %v892_v16 }
  0x37   : > { %802 = vmatpush3.bf16.msra.mxu0 %v892_v16 }
  0xed   : > { %v773_v18 = vpop.f32.mrb[0].mxu0 }
  0xee   : > { %v366_v19 = vadd.f32 %v773_v18, %v711_v17  ;;  %v357_v20 = vpop.f32.mrb[1].mxu0 }
  0xef   : > { %v358_v21 = vadd.f32 %v711_v17, %v357_v20  ;;  %v774_v22 = vpop.f32.mrb[2].mxu0 }
  0xf0   : > { %v369_v23 = vadd.f32 %v774_v22, %v711_v17  ;;  %v360_v24 = vpop.f32.mrb[3].mxu0  ;;  %v422_v26 = vmax.f32 %v366_v19, 0.0 }
  0xf1   : > { %v361_v25 = vadd.f32 %v711_v17, %v360_v24  ;;  %v420_v28 = vmax.f32 %v358_v21, 0.0 }
  0xf2   : > { %v423_v27 = vmax.f32 %v369_v23, 0.0 }
  0xf3   : > { %v421_v29 = vmax.f32 %v361_v25, 0.0 }
  0xf4   : > { %v437_v30 = vpack.c.bf16 %v423_v27, %v422_v26 }
  0xf5   : > { %v436_v31 = vpack.c.bf16 %v421_v29, %v420_v28  ;;  %v777_v32 = vpop.f32.mrb[4].mxu0 }
  0xf6   : > { %v382_v33 = vadd.f32 %v777_v32, %v711_v17  ;;  %v373_v34 = vpop.f32.mrb[5].mxu0 }
  0xf7   : > { %v374_v35 = vadd.f32 %v711_v17, %v373_v34  ;;  %v778_v36 = vpop.f32.mrb[6].mxu0  ;;  %803 = vmatprep.mubr.bf16.mxu0 %v436_v31 }
  0xf8   : > { %v385_v37 = vadd.f32 %v778_v36, %v711_v17  ;;  %v376_v38 = vpop.f32.mrb[7].mxu0  ;;  %804 = vmatmul.mubr.bf16.vlgmr.msra.gmra.mrb[16].mxu0 %v437_v30  ;;  %v426_v40 = vmax.f32 %v382_v33, 0.0 }
  0xf9   : > { %v377_v39 = vadd.f32 %v711_v17, %v376_v38  ;;  %v424_v42 = vmax.f32 %v374_v35, 0.0 }
  0xfa   : > { %v427_v41 = vmax.f32 %v385_v37, 0.0 }
  0xfb   : > { %v425_v43 = vmax.f32 %v377_v39, 0.0 }
  0xfc   : > { %v439_v44 = vpack.c.bf16 %v427_v41, %v426_v40 }
  0xfd   : > { %v781_v45 = vpop.f32.mrb[8].mxu0  ;;  %v438_v46 = vpack.c.bf16 %v425_v43, %v424_v42 }
  0xfe   : > { %v398_v47 = vadd.f32 %v781_v45, %v711_v17  ;;  %v389_v48 = vpop.f32.mrb[9].mxu0 }
  0xff   : > { %v390_v49 = vadd.f32 %v711_v17, %v389_v48  ;;  %v782_v50 = vpop.f32.mrb[10].mxu0  ;;  %807 = vmatprep.mubr.bf16.mxu1 %v438_v46 }
 0x100   : > { %v401_v51 = vadd.f32 %v782_v50, %v711_v17  ;;  %v392_v52 = vpop.f32.mrb[11].mxu0  ;;  %808 = vmatmul.mubr.bf16.vlgmr.msra.gmra.mrb[0].mxu1 %v439_v44  ;;  %v430_v54 = vmax.f32 %v398_v47, 0.0 }
 0x101   : > { %v393_v53 = vadd.f32 %v711_v17, %v392_v52  ;;  %v428_v56 = vmax.f32 %v390_v49, 0.0 }
 0x102   : > { %v431_v55 = vmax.f32 %v401_v51, 0.0 }
 0x103   : > { %v429_v57 = vmax.f32 %v393_v53, 0.0 }
 0x104   : > { %v441_v58 = vpack.c.bf16 %v431_v55, %v430_v54 }
 0x105   : > { %v440_v59 = vpack.c.bf16 %v429_v57, %v428_v56  ;;  %v785_v60 = vpop.f32.mrb[12].mxu0 }
 0x106   : > { %v414_v61 = vadd.f32 %v785_v60, %v711_v17  ;;  %v405_v62 = vpop.f32.mrb[13].mxu0 }
 0x107   : > { %v406_v63 = vadd.f32 %v711_v17, %v405_v62  ;;  %v786_v0 = vpop.f32.mrb[14].mxu0  ;;  %811 = vmatprep.mubr.bf16.mxu1 %v440_v59 }
 0x108   : > { %v417_v1 = vadd.f32 %v786_v0, %v711_v17  ;;  %v408_v2 = vpop.f32.mrb[15].mxu0  ;;  %812 = vmatmul.mubr.bf16.gmra.mrb[4].mxu1 %v441_v58  ;;  %v434_v4 = vmax.f32 %v414_v61, 0.0 }
 0x109   : > { %v409_v3 = vadd.f32 %v711_v17, %v408_v2  ;;  %v432_v6 = vmax.f32 %v406_v63, 0.0 }
 0x10a   : > { %v435_v5 = vmax.f32 %v417_v1, 0.0 }
 0x10b   : > { %v433_v7 = vmax.f32 %v409_v3, 0.0 }
 0x10c   : > { %v443_v8 = vpack.c.bf16 %v435_v5, %v434_v4 }
 0x10d   : > { %v442_v9 = vpack.c.bf16 %v433_v7, %v432_v6 }
 0x10f   : > { %815 = vmatprep.mubr.bf16.mxu1 %v442_v9 }
 0x110   : > { %816 = vmatmul.mubr.bf16.gmra.mrb[8].mxu1 %v443_v8 }
 0x1cb   : > { %v805_v11 = vpop.f32.mrb[16].mxu0 }
 0x1cc   : > { %v558_v12 = vadd.f32 %v805_v11, %v729_v10  ;;  %v549_v13 = vpop.f32.mrb[17].mxu0 }
 0x1cd   : > { %v550_v14 = vadd.f32 %v729_v10, %v549_v13  ;;  %v806_v15 = vpop.f32.mrb[18].mxu0 }
 0x1ce   : > { %614 = vst [vmem:[%s1096_s23 + $0x10] sm:$0xff] %v558_v12  ;;  %v561_v16 = vadd.f32 %v806_v15, %v729_v10  ;;  %v552_v17 = vpop.f32.mrb[19].mxu0 }
 0x1cf   : > { %612 = vst [vmem:[%s1096_s23] sm:$0xff] %v550_v14  ;;  %v553_v18 = vadd.f32 %v729_v10, %v552_v17 }
 0x1d0   : > { %615 = vst [vmem:[%s1096_s23 + $0x18] sm:$0xff] %v561_v16 }
 0x1d1   : > { %613 = vst [vmem:[%s1096_s23 + $0x8] sm:$0xff] %v553_v18 }
 0x1d3   : > { %v809_v19 = vpop.f32.mrb[0].mxu1 }
 0x1d4   : > { %v574_v20 = vadd.f32 %v809_v19, %v729_v10  ;;  %v565_v21 = vpop.f32.mrb[1].mxu1 }
 0x1d5   : > { %v566_v22 = vadd.f32 %v729_v10, %v565_v21  ;;  %v810_v23 = vpop.f32.mrb[2].mxu1 }
 0x1d6   : > { %618 = vst [vmem:[%s1096_s23 + $0x30] sm:$0xff] %v574_v20  ;;  %v577_v24 = vadd.f32 %v810_v23, %v729_v10  ;;  %v568_v25 = vpop.f32.mrb[3].mxu1 }
 0x1d7   : > { %616 = vst [vmem:[%s1096_s23 + $0x20] sm:$0xff] %v566_v22  ;;  %v569_v26 = vadd.f32 %v729_v10, %v568_v25 }
 0x1d8   : > { %619 = vst [vmem:[%s1096_s23 + $0x38] sm:$0xff] %v577_v24 }
 0x1d9   : > { %617 = vst [vmem:[%s1096_s23 + $0x28] sm:$0xff] %v569_v26 }
 0x1db   : > { %v813_v27 = vpop.f32.mrb[4].mxu1 }
 0x1dc   : > { %v590_v28 = vadd.f32 %v813_v27, %v729_v10  ;;  %v581_v29 = vpop.f32.mrb[5].mxu1 }
 0x1dd   : > { %v582_v30 = vadd.f32 %v729_v10, %v581_v29  ;;  %v814_v31 = vpop.f32.mrb[6].mxu1 }
 0x1de   : > { %622 = vst [vmem:[%s1096_s23 + $0x50] sm:$0xff] %v590_v28  ;;  %v593_v32 = vadd.f32 %v814_v31, %v729_v10  ;;  %v584_v33 = vpop.f32.mrb[7].mxu1 }
 0x1df   : > { %620 = vst [vmem:[%s1096_s23 + $0x40] sm:$0xff] %v582_v30  ;;  %v585_v34 = vadd.f32 %v729_v10, %v584_v33 }
 0x1e0   : > { %623 = vst [vmem:[%s1096_s23 + $0x58] sm:$0xff] %v593_v32 }
 0x1e1   : > { %621 = vst [vmem:[%s1096_s23 + $0x48] sm:$0xff] %v585_v34 }
 0x1e3   : > { %v817_v35 = vpop.f32.mrb[8].mxu1 }
 0x1e4   : > { %v606_v36 = vadd.f32 %v817_v35, %v729_v10  ;;  %v597_v37 = vpop.f32.mrb[9].mxu1 }
 0x1e5   : > { %v598_v38 = vadd.f32 %v729_v10, %v597_v37  ;;  %v818_v39 = vpop.f32.mrb[10].mxu1 }
 0x1e6   : > { %626 = vst [vmem:[%s1096_s23 + $0x70] sm:$0xff] %v606_v36  ;;  %v609_v40 = vadd.f32 %v818_v39, %v729_v10  ;;  %v600_v41 = vpop.f32.mrb[11].mxu1 }
 0x1e7   : > { %624 = vst [vmem:[%s1096_s23 + $0x60] sm:$0xff] %v598_v38  ;;  %v601_v42 = vadd.f32 %v729_v10, %v600_v41 }
 0x1e8   : > { %627 = vst [vmem:[%s1096_s23 + $0x78] sm:$0xff] %v609_v40 }
 0x1e9   : > { %625 = vst [vmem:[%s1096_s23 + $0x68] sm:$0xff] %v601_v42 }
 0x1ea   : > { %906 = shalt.err (!%p903_p3)
}
 0x1eb   : > { %s907_s12 = scalar_lea.hbm %s1116_s7, 2048  ;;  %s911_s15 = scalar_lea.hbm %s1171_s5, 4096 }
 0x1ec   : > { %p908_p4 = scmp.ne.s32.totalorder %s1116_s7, %s907_s12  ;;  %p912_p9 = scmp.lt.u32.totalorder %s1116_s7, %s1171_s5 }
 0x1ed   : > { %p913_p10 = scmp.lt.u32.totalorder %s911_s15, %s907_s12  ;;  %p915_p12 = scmp.lt.u32.totalorder %s907_s12, %s1116_s7 }
 0x1ee   : > { %p909_p7 = pnand %p908_p4, %p1028_p5 }
 0x1ef   : > { %p914_p11 = por %p913_p10, %p912_p9 }
 0x1f0   : > { %p910_p8 = pneg %p909_p7 }
 0x1f1   : > { %p916_p13 = por %p915_p12, %p914_p11 }
 0x1f3   : > { %p917_p0 = pnand %p916_p13, %p910_p8 }
 0x1f5   : > { %920 = shalt.err (!%p917_p0)
}
 0x1f6   : > { %s958_s23 = smov 128   ;;  %s959_s25 = smov 8  }
 0x1f7   : > { %835 = dma.vmem_to_hbm [thread:$0]  (%p1028_p5), %s1118_s26, 2048, %s1116_s7, %s1125_s22, %s958_s23, %s958_s23, %s959_s25  }
 0x1f8 PF: > { %p841_p1 = scmp.ge.s32.totalorder %s955_s21, 2  ;;  %s657_s30 = sand.u32 1, %s943_s18  }
 0x1f9   : > { %s658_s6 = scalar_lea.sflag [#allocation3], %s657_s30 }
 0x1fa   : > { %p838_p2 = pnand %p841_p1, %p1032_p6 }
 0x1fc   : > { %938 = dma.done.wait (!%p838_p2), %s658_s6, 2048  }
 0x1fd   : > { %940 = vsyncadd (!%p838_p2), %s658_s6, 4294965248  ;;  %p15_p3 = scmp.ge.s32.totalorder %s1015_s24, 4   ;;  %s1174_s18 = smov %s947_s19 }
 0x1fe   : > { %s1175_s19 = smov %s951_s20  ;;  %s1176_s20 = smov %s1026_s27 }
 0x1ff   : > { %s1177_s21 = smov %s1015_s24  ;;  %17 = sbr.rel (!%p15_p3) target bundleno = 3 (0x3), region = 75 }
 0x206   :  { %663 = vsyncpa [#allocation3], 1 }
 0x207   :  { %665 = vsyncpa [#allocation3 + $0x1], 1 }

</bundles_post_ra>
